<compile_context>
chip_gen: v6e
topology: v6e:2x2x1
jax: 0.10.0
libtpu: 0.0.40
codegen_flags: <defaults>
</compile_context>

<pallas_src>
import jax
import jax.numpy as jnp
from jax.experimental import pallas as pl
from jax.experimental.pallas import tpu as pltpu


# ---------------------------------------------------------------------------
# Kernel factory: one batch element per grid step, everything in (C, H*W).
# ---------------------------------------------------------------------------
def _make_kernel(H, W, ZPAD):
    HW = H * W

    def kernel(x_ref, s1_ref, h1_ref, dww_ref, dwb_ref,
               w1_ref, b1_ref, w2_ref, wr_ref, bo_ref,
               ml_ref, mr_ref, out_ref, pad_ref):
        C = x_ref.shape[1]
        x = x_ref[0]                                        # (C, HW)

        # Re-zero only the halo pads each step (aligned 128-wide stores; keeps
        # the parallel batch axis safe since there is no cross-step state),
        # then write BN1(x) into the interior in a single fused affine store.
        zpad = jnp.zeros((C, ZPAD), jnp.float32)
        pad_ref[:, pl.ds(0, ZPAD)] = zpad
        pad_ref[:, pl.ds(ZPAD + HW, ZPAD)] = zpad
        pad_ref[:, pl.ds(ZPAD, HW)] = x * s1_ref[...] + h1_ref[...]

        # Depthwise 3x3, padding=1: 9 statically shifted lane-slices of the
        # flat padded image.  Vertical out-of-range taps land in the zero halo;
        # horizontal wrap-around taps are zeroed by the precomputed masks.
        acc = jnp.zeros((C, HW), jnp.float32)
        for dy in range(3):
            for dx in range(3):
                off = (dy - 1) * W + (dx - 1)
                tap = pad_ref[:, pl.ds(ZPAD + off, HW)]     # (C, HW)
                if dx == 0:
                    tap = tap * ml_ref[...]                 # kill col == 0
                elif dx == 2:
                    tap = tap * mr_ref[...]                 # kill col == W-1
                acc = acc + tap * dww_ref[3 * dy + dx]      # (C,1) broadcast
        feat = acc + dwb_ref[...] + x                       # (C, HW)

        # Folded channel MLP + residual projection (BN2/BN3/BN4 folded into
        # w1/w2/wr and a single combined output bias in the wrapper).
        h = jnp.maximum(
            jnp.dot(w1_ref[...], feat, preferred_element_type=jnp.float32)
            + b1_ref[...], 0.0)                             # (Cm, HW)
        out_ref[0] = (jnp.dot(w2_ref[...], h, preferred_element_type=jnp.float32)
                      + jnp.dot(wr_ref[...], feat, preferred_element_type=jnp.float32)
                      + bo_ref[...])                        # (Co, HW) lane-dense
    return kernel


# ---------------------------------------------------------------------------
# Parameter setup (deterministic, PyTorch-shaped)
# ---------------------------------------------------------------------------
def _bn_affine(p, eps=1e-5):
    scale = p["gamma"] * jax.lax.rsqrt(p["var"] + eps)
    shift = p["beta"] - p["mean"] * scale
    return scale, shift


def init_params(key, C, Cb, Co):
    assert Cb == C, "empty bayesian_reinforcer => num_bayesian_channels == num_input_channels"
    C2, Cm = C + Cb, 2 * C
    keys = iter(jax.random.split(key, 32))

    def nrm(shape, s):
        return (jax.random.normal(next(keys), shape) * s).astype(jnp.float32)

    def bn(n):
        return dict(
            gamma=nrm((n,), 0.1) + 1.0,
            beta=nrm((n,), 0.1),
            mean=nrm((n,), 0.1),
            var=jax.random.uniform(next(keys), (n,), minval=0.5, maxval=1.5).astype(jnp.float32),
        )

    return dict(
        bn1=bn(C),
        dw_w=nrm((C, 1, 3, 3), 0.2),      # depthwise Conv2d weight (C,1,3,3)
        dw_b=nrm((C,), 0.05),
        bn2=bn(C2),
        w1=nrm((Cm, C2), 0.3),            # Conv1x1 (Cm, C2)
        b1=nrm((Cm,), 0.05),
        bn3=bn(Cm),
        w2=nrm((Co, Cm), 0.3),            # Conv1x1 (Co, Cm)
        b2=nrm((Co,), 0.05),
        bn4=bn(C2),
        wr=nrm((Co, C2), 0.3),            # Conv1x1 (Co, C2)
        br=nrm((Co,), 0.05),
    )


# ---------------------------------------------------------------------------
# Wrapper: constant-folds eval-mode BNs into the 1x1 convs, calls pallas_call.
# ---------------------------------------------------------------------------
def kernel_matching_encoder(x_nchw, params):
    """x_nchw: (N, C, H, W) float32  ->  (N, Co, H, W) float32."""
    x = x_nchw.astype(jnp.float32)
    N, C, H, W = x.shape
    HW = H * W
    Co, Cm = params["w2"].shape
    assert params["w1"].shape[1] == 2 * C

    s1, h1 = _bn_affine(params["bn1"])
    s2, h2 = _bn_affine(params["bn2"])
    s3, h3 = _bn_affine(params["bn3"])
    s4, h4 = _bn_affine(params["bn4"])

    # depthwise weights (C,1,3,3) -> (9, C, 1); BN1 is applied in-kernel.
    dww = jnp.transpose(params["dw_w"][:, 0], (1, 2, 0)).reshape(9, C, 1)
    dwb = params["dw_b"].reshape(C, 1)

    # Fold BN2 into w1/b1; both halves of `combined` see the same `features`,
    # so the two half-K matmuls merge into one (Cm, C) weight.
    w1a, w1b = params["w1"][:, :C], params["w1"][:, C:]
    s2a, s2b, h2a, h2b = s2[:C], s2[C:], h2[:C], h2[C:]
    w1p = w1a * s2a[None, :] + w1b * s2b[None, :]                       # (Cm, C)
    b1p = (w1a @ h2a + w1b @ h2b + params["b1"]).reshape(Cm, 1)

    # Fold BN3 into w2/b2 (post-ReLU affine).
    w2p = params["w2"] * s3[None, :]                                    # (Co, Cm)
    b2p = params["w2"] @ h3 + params["b2"]                              # (Co,)

    # Fold BN4 into wr/br (merged halves, same trick as w1).
    wra, wrb = params["wr"][:, :C], params["wr"][:, C:]
    s4a, s4b, h4a, h4b = s4[:C], s4[C:], h4[:C], h4[C:]
    wrp = wra * s4a[None, :] + wrb * s4b[None, :]                       # (Co, C)
    brp = wra @ h4a + wrb @ h4b + params["br"]                          # (Co,)

    bo = (b2p + brp).reshape(Co, 1)                                     # single output bias

    # Precomputed 0/1 horizontal-edge masks (kills wrap-around taps).
    col = jnp.arange(HW, dtype=jnp.int32) % W
    mask_l = (col != 0).astype(jnp.float32).reshape(1, HW)
    mask_r = (col != W - 1).astype(jnp.float32).reshape(1, HW)

    # Halo size: >= W+1 taps each side, rounded to 128 lanes for aligned stores.
    ZPAD = ((W + 1 + 127) // 128) * 128
    x_flat = x.reshape(N, C, HW)

    args = [x_flat,
            s1.reshape(C, 1), h1.reshape(C, 1), dww, dwb,
            w1p, b1p, w2p, wrp, bo, mask_l, mask_r]

    def full_spec(a):
        nd = a.ndim
        return pl.BlockSpec(a.shape, lambda n, _nd=nd: (0,) * _nd)

    in_specs = [pl.BlockSpec((1, C, HW), lambda n: (n, 0, 0))]
    in_specs += [full_spec(a) for a in args[1:]]

    # Explicit VMEM budget: double-buffered in/out blocks + scratch + params.
    block_bytes = 4 * HW * (C + Co)
    scratch_bytes = 4 * C * (2 * ZPAD + HW)
    param_bytes = 4 * sum(int(a.size) for a in args[1:])
    vmem_limit = int(min(2 * (2 * block_bytes + scratch_bytes + param_bytes)
                         + (4 << 20), 64 << 20))

    out = pl.pallas_call(
        _make_kernel(H, W, ZPAD),
        out_shape=jax.ShapeDtypeStruct((N, Co, HW), jnp.float32),
        grid=(N,),
        in_specs=in_specs,
        out_specs=pl.BlockSpec((1, Co, HW), lambda n: (n, 0, 0)),
        scratch_shapes=[pltpu.VMEM((C, 2 * ZPAD + HW), jnp.float32)],
        compiler_params=pltpu.CompilerParams(
            dimension_semantics=("parallel",),
            vmem_limit_bytes=vmem_limit),
    )(*args)

    return out.reshape(N, Co, H, W)


# ---------------------------------------------------------------------------
# Pure-JAX reference (eval-mode BatchNorm) for validation
# ---------------------------------------------------------------------------
def ref_forward(x_nchw, params):
    x = jnp.transpose(x_nchw, (0, 2, 3, 1)).astype(jnp.float32)
    N, H, W, C = x.shape
    s1, h1 = _bn_affine(params["bn1"])
    s2, h2 = _bn_affine(params["bn2"])
    s3, h3 = _bn_affine(params["bn3"])
    s4, h4 = _bn_affine(params["bn4"])
    dww = jnp.transpose(params["dw_w"][:, 0], (1, 2, 0))

    bn1 = x * s1 + h1
    p = jnp.pad(bn1, ((0, 0), (1, 1), (1, 1), (0, 0)))
    feat = sum(p[:, dy:dy + H, dx:dx + W, :] * dww[dy, dx]
               for dy in range(3) for dx in range(3))
    feat = feat + params["dw_b"] + x
    comb = jnp.concatenate([feat, feat], axis=-1)
    h = jnp.maximum((comb * s2 + h2) @ params["w1"].T + params["b1"], 0.0)
    mlp = (h * s3 + h3) @ params["w2"].T + params["b2"]
    res = (comb * s4 + h4) @ params["wr"].T + params["br"]
    return jnp.transpose(mlp + res, (0, 3, 1, 2))


if __name__ == "__main__":
    # Small shapes: batch=2, in_channels=4, bayesian=4, out_channels=8, 16x16
    N, C, Cb, Co, H, W = 2, 4, 4, 8, 16, 16
    key = jax.random.PRNGKey(0)
    kx, kp = jax.random.split(key)
    x = jax.random.normal(kx, (N, C, H, W), dtype=jnp.float32)
    params = init_params(kp, C, Cb, Co)

    out = kernel_matching_encoder(x, params)
    out = jax.block_until_ready(out)

    ref = ref_forward(x, params)
    assert out.shape == (N, Co, H, W), out.shape
    max_err = float(jnp.max(jnp.abs(out - ref)))
    assert max_err < 5e-4, f"mismatch vs reference: {max_err}"
    print("KERNEL_OK")
</pallas_src>

<mosaic_0001>
module attributes {stable_mosaic.version = 11 : i64} {
  func.func @kernel(%arg0: i32, %arg1: memref<1x4x256xf32, #tpu.memory_space<vmem>>, %arg2: memref<4x1xf32, #tpu.memory_space<vmem>>, %arg3: memref<4x1xf32, #tpu.memory_space<vmem>>, %arg4: memref<9x4x1xf32, #tpu.memory_space<vmem>>, %arg5: memref<4x1xf32, #tpu.memory_space<vmem>>, %arg6: memref<8x4xf32, #tpu.memory_space<vmem>>, %arg7: memref<8x1xf32, #tpu.memory_space<vmem>>, %arg8: memref<8x8xf32, #tpu.memory_space<vmem>>, %arg9: memref<8x4xf32, #tpu.memory_space<vmem>>, %arg10: memref<8x1xf32, #tpu.memory_space<vmem>>, %arg11: memref<1x256xf32, #tpu.memory_space<vmem>>, %arg12: memref<1x256xf32, #tpu.memory_space<vmem>>, %arg13: memref<1x8x256xf32, #tpu.memory_space<vmem>>, %arg14: memref<4x512xf32, #tpu.memory_space<vmem>>) attributes {dimension_semantics = [#tpu.dimension_semantics<parallel>], iteration_bounds = array<i64: 2>, scalar_prefetch = 0 : i64, scratch_operands = 1 : i64, tpu.core_type = #tpu.core_type<tc>, window_params = [{transform_indices = @transform_0, window_bounds = array<i64: 1, 4, 256>}, {pipeline_mode = #tpu.pipeline_mode<synchronous>, transform_indices = @transform_1, window_bounds = array<i64: 4, 1>}, {pipeline_mode = #tpu.pipeline_mode<synchronous>, transform_indices = @transform_2, window_bounds = array<i64: 4, 1>}, {pipeline_mode = #tpu.pipeline_mode<synchronous>, transform_indices = @transform_3, window_bounds = array<i64: 9, 4, 1>}, {pipeline_mode = #tpu.pipeline_mode<synchronous>, transform_indices = @transform_4, window_bounds = array<i64: 4, 1>}, {pipeline_mode = #tpu.pipeline_mode<synchronous>, transform_indices = @transform_5, window_bounds = array<i64: 8, 4>}, {pipeline_mode = #tpu.pipeline_mode<synchronous>, transform_indices = @transform_6, window_bounds = array<i64: 8, 1>}, {pipeline_mode = #tpu.pipeline_mode<synchronous>, transform_indices = @transform_7, window_bounds = array<i64: 8, 8>}, {pipeline_mode = #tpu.pipeline_mode<synchronous>, transform_indices = @transform_8, window_bounds = array<i64: 8, 4>}, {pipeline_mode = #tpu.pipeline_mode<synchronous>, transform_indices = @transform_9, window_bounds = array<i64: 8, 1>}, {pipeline_mode = #tpu.pipeline_mode<synchronous>, transform_indices = @transform_10, window_bounds = array<i64: 1, 256>}, {pipeline_mode = #tpu.pipeline_mode<synchronous>, transform_indices = @transform_11, window_bounds = array<i64: 1, 256>}, {transform_indices = @transform_12, window_bounds = array<i64: 1, 8, 256>}]} {
    %c0 = arith.constant 0 : index
    %c0_0 = arith.constant 0 : index
    %c0_1 = arith.constant 0 : index
    %0 = vector.load %arg1[%c0, %c0_0, %c0_1] : memref<1x4x256xf32, #tpu.memory_space<vmem>>, vector<1x4x256xf32>
    %1 = vector.shape_cast %0 : vector<1x4x256xf32> to vector<4x256xf32>
    %cst = arith.constant 0.000000e+00 : f32
    %2 = vector.broadcast %cst : f32 to vector<4x128xf32>
    %c0_2 = arith.constant 0 : index
    %c0_3 = arith.constant 0 : index
    %3 = vector.load %arg14[%c0_2, %c0_3] : memref<4x512xf32, #tpu.memory_space<vmem>>, vector<4x128xf32>
    tpu.vector_store %arg14[%c0_2, %c0_3], %2 {strides = array<i32>} : memref<4x512xf32, #tpu.memory_space<vmem>>, vector<4x128xf32>,
    %c0_4 = arith.constant 0 : index
    %c384 = arith.constant 384 : index
    %4 = vector.load %arg14[%c0_4, %c384] : memref<4x512xf32, #tpu.memory_space<vmem>>, vector<4x128xf32>
    tpu.vector_store %arg14[%c0_4, %c384], %2 {strides = array<i32>} : memref<4x512xf32, #tpu.memory_space<vmem>>, vector<4x128xf32>,
    %c0_5 = arith.constant 0 : index
    %c0_6 = arith.constant 0 : index
    %5 = vector.load %arg2[%c0_5, %c0_6] : memref<4x1xf32, #tpu.memory_space<vmem>>, vector<4x1xf32>
    %6 = vector.broadcast %5 : vector<4x1xf32> to vector<4x256xf32>
    %7 = arith.mulf %1, %6 : vector<4x256xf32>
    %c0_7 = arith.constant 0 : index
    %c0_8 = arith.constant 0 : index
    %8 = vector.load %arg3[%c0_7, %c0_8] : memref<4x1xf32, #tpu.memory_space<vmem>>, vector<4x1xf32>
    %9 = vector.broadcast %8 : vector<4x1xf32> to vector<4x256xf32>
    %10 = arith.addf %7, %9 : vector<4x256xf32>
    %c0_9 = arith.constant 0 : index
    %c128 = arith.constant 128 : index
    %11 = vector.load %arg14[%c0_9, %c128] : memref<4x512xf32, #tpu.memory_space<vmem>>, vector<4x256xf32>
    tpu.vector_store %arg14[%c0_9, %c128], %10 {strides = array<i32>} : memref<4x512xf32, #tpu.memory_space<vmem>>, vector<4x256xf32>,
    %cst_10 = arith.constant 0.000000e+00 : f32
    %12 = vector.broadcast %cst_10 : f32 to vector<4x256xf32>
    %c0_11 = arith.constant 0 : index
    %c111 = arith.constant 111 : index
    %13 = vector.load %arg14[%c0_11, %c111] : memref<4x512xf32, #tpu.memory_space<vmem>>, vector<4x256xf32>
    %c0_12 = arith.constant 0 : index
    %c0_13 = arith.constant 0 : index
    %14 = vector.load %arg11[%c0_12, %c0_13] : memref<1x256xf32, #tpu.memory_space<vmem>>, vector<1x256xf32>
    %15 = vector.broadcast %14 : vector<1x256xf32> to vector<4x256xf32>
    %16 = arith.mulf %13, %15 : vector<4x256xf32>
    %c0_14 = arith.constant 0 : index
    %c0_15 = arith.constant 0 : index
    %c0_16 = arith.constant 0 : index
    %17 = vector.load %arg4[%c0_14, %c0_15, %c0_16] : memref<9x4x1xf32, #tpu.memory_space<vmem>>, vector<1x4x1xf32>
    %18 = vector.shape_cast %17 : vector<1x4x1xf32> to vector<4x1xf32>
    %19 = vector.broadcast %18 : vector<4x1xf32> to vector<4x256xf32>
    %20 = arith.mulf %16, %19 : vector<4x256xf32>
    %21 = arith.addf %12, %20 : vector<4x256xf32>
    %c0_17 = arith.constant 0 : index
    %c112 = arith.constant 112 : index
    %22 = vector.load %arg14[%c0_17, %c112] : memref<4x512xf32, #tpu.memory_space<vmem>>, vector<4x256xf32>
    %c1 = arith.constant 1 : index
    %c0_18 = arith.constant 0 : index
    %c0_19 = arith.constant 0 : index
    %23 = vector.load %arg4[%c1, %c0_18, %c0_19] : memref<9x4x1xf32, #tpu.memory_space<vmem>>, vector<1x4x1xf32>
    %24 = vector.shape_cast %23 : vector<1x4x1xf32> to vector<4x1xf32>
    %25 = vector.broadcast %24 : vector<4x1xf32> to vector<4x256xf32>
    %26 = arith.mulf %22, %25 : vector<4x256xf32>
    %27 = arith.addf %21, %26 : vector<4x256xf32>
    %c0_20 = arith.constant 0 : index
    %c113 = arith.constant 113 : index
    %28 = vector.load %arg14[%c0_20, %c113] : memref<4x512xf32, #tpu.memory_space<vmem>>, vector<4x256xf32>
    %c0_21 = arith.constant 0 : index
    %c0_22 = arith.constant 0 : index
    %29 = vector.load %arg12[%c0_21, %c0_22] : memref<1x256xf32, #tpu.memory_space<vmem>>, vector<1x256xf32>
    %30 = vector.broadcast %29 : vector<1x256xf32> to vector<4x256xf32>
    %31 = arith.mulf %28, %30 : vector<4x256xf32>
    %c2 = arith.constant 2 : index
    %c0_23 = arith.constant 0 : index
    %c0_24 = arith.constant 0 : index
    %32 = vector.load %arg4[%c2, %c0_23, %c0_24] : memref<9x4x1xf32, #tpu.memory_space<vmem>>, vector<1x4x1xf32>
    %33 = vector.shape_cast %32 : vector<1x4x1xf32> to vector<4x1xf32>
    %34 = vector.broadcast %33 : vector<4x1xf32> to vector<4x256xf32>
    %35 = arith.mulf %31, %34 : vector<4x256xf32>
    %36 = arith.addf %27, %35 : vector<4x256xf32>
    %c0_25 = arith.constant 0 : index
    %c127 = arith.constant 127 : index
    %37 = vector.load %arg14[%c0_25, %c127] : memref<4x512xf32, #tpu.memory_space<vmem>>, vector<4x256xf32>
    %c0_26 = arith.constant 0 : index
    %c0_27 = arith.constant 0 : index
    %38 = vector.load %arg11[%c0_26, %c0_27] : memref<1x256xf32, #tpu.memory_space<vmem>>, vector<1x256xf32>
    %39 = vector.broadcast %38 : vector<1x256xf32> to vector<4x256xf32>
    %40 = arith.mulf %37, %39 : vector<4x256xf32>
    %c3 = arith.constant 3 : index
    %c0_28 = arith.constant 0 : index
    %c0_29 = arith.constant 0 : index
    %41 = vector.load %arg4[%c3, %c0_28, %c0_29] : memref<9x4x1xf32, #tpu.memory_space<vmem>>, vector<1x4x1xf32>
    %42 = vector.shape_cast %41 : vector<1x4x1xf32> to vector<4x1xf32>
    %43 = vector.broadcast %42 : vector<4x1xf32> to vector<4x256xf32>
    %44 = arith.mulf %40, %43 : vector<4x256xf32>
    %45 = arith.addf %36, %44 : vector<4x256xf32>
    %c0_30 = arith.constant 0 : index
    %c128_31 = arith.constant 128 : index
    %46 = vector.load %arg14[%c0_30, %c128_31] : memref<4x512xf32, #tpu.memory_space<vmem>>, vector<4x256xf32>
    %c4 = arith.constant 4 : index
    %c0_32 = arith.constant 0 : index
    %c0_33 = arith.constant 0 : index
    %47 = vector.load %arg4[%c4, %c0_32, %c0_33] : memref<9x4x1xf32, #tpu.memory_space<vmem>>, vector<1x4x1xf32>
    %48 = vector.shape_cast %47 : vector<1x4x1xf32> to vector<4x1xf32>
    %49 = vector.broadcast %48 : vector<4x1xf32> to vector<4x256xf32>
    %50 = arith.mulf %46, %49 : vector<4x256xf32>
    %51 = arith.addf %45, %50 : vector<4x256xf32>
    %c0_34 = arith.constant 0 : index
    %c129 = arith.constant 129 : index
    %52 = vector.load %arg14[%c0_34, %c129] : memref<4x512xf32, #tpu.memory_space<vmem>>, vector<4x256xf32>
    %c0_35 = arith.constant 0 : index
    %c0_36 = arith.constant 0 : index
    %53 = vector.load %arg12[%c0_35, %c0_36] : memref<1x256xf32, #tpu.memory_space<vmem>>, vector<1x256xf32>
    %54 = vector.broadcast %53 : vector<1x256xf32> to vector<4x256xf32>
    %55 = arith.mulf %52, %54 : vector<4x256xf32>
    %c5 = arith.constant 5 : index
    %c0_37 = arith.constant 0 : index
    %c0_38 = arith.constant 0 : index
    %56 = vector.load %arg4[%c5, %c0_37, %c0_38] : memref<9x4x1xf32, #tpu.memory_space<vmem>>, vector<1x4x1xf32>
    %57 = vector.shape_cast %56 : vector<1x4x1xf32> to vector<4x1xf32>
    %58 = vector.broadcast %57 : vector<4x1xf32> to vector<4x256xf32>
    %59 = arith.mulf %55, %58 : vector<4x256xf32>
    %60 = arith.addf %51, %59 : vector<4x256xf32>
    %c0_39 = arith.constant 0 : index
    %c143 = arith.constant 143 : index
    %61 = vector.load %arg14[%c0_39, %c143] : memref<4x512xf32, #tpu.memory_space<vmem>>, vector<4x256xf32>
    %c0_40 = arith.constant 0 : index
    %c0_41 = arith.constant 0 : index
    %62 = vector.load %arg11[%c0_40, %c0_41] : memref<1x256xf32, #tpu.memory_space<vmem>>, vector<1x256xf32>
    %63 = vector.broadcast %62 : vector<1x256xf32> to vector<4x256xf32>
    %64 = arith.mulf %61, %63 : vector<4x256xf32>
    %c6 = arith.constant 6 : index
    %c0_42 = arith.constant 0 : index
    %c0_43 = arith.constant 0 : index
    %65 = vector.load %arg4[%c6, %c0_42, %c0_43] : memref<9x4x1xf32, #tpu.memory_space<vmem>>, vector<1x4x1xf32>
    %66 = vector.shape_cast %65 : vector<1x4x1xf32> to vector<4x1xf32>
    %67 = vector.broadcast %66 : vector<4x1xf32> to vector<4x256xf32>
    %68 = arith.mulf %64, %67 : vector<4x256xf32>
    %69 = arith.addf %60, %68 : vector<4x256xf32>
    %c0_44 = arith.constant 0 : index
    %c144 = arith.constant 144 : index
    %70 = vector.load %arg14[%c0_44, %c144] : memref<4x512xf32, #tpu.memory_space<vmem>>, vector<4x256xf32>
    %c7 = arith.constant 7 : index
    %c0_45 = arith.constant 0 : index
    %c0_46 = arith.constant 0 : index
    %71 = vector.load %arg4[%c7, %c0_45, %c0_46] : memref<9x4x1xf32, #tpu.memory_space<vmem>>, vector<1x4x1xf32>
    %72 = vector.shape_cast %71 : vector<1x4x1xf32> to vector<4x1xf32>
    %73 = vector.broadcast %72 : vector<4x1xf32> to vector<4x256xf32>
    %74 = arith.mulf %70, %73 : vector<4x256xf32>
    %75 = arith.addf %69, %74 : vector<4x256xf32>
    %c0_47 = arith.constant 0 : index
    %c145 = arith.constant 145 : index
    %76 = vector.load %arg14[%c0_47, %c145] : memref<4x512xf32, #tpu.memory_space<vmem>>, vector<4x256xf32>
    %c0_48 = arith.constant 0 : index
    %c0_49 = arith.constant 0 : index
    %77 = vector.load %arg12[%c0_48, %c0_49] : memref<1x256xf32, #tpu.memory_space<vmem>>, vector<1x256xf32>
    %78 = vector.broadcast %77 : vector<1x256xf32> to vector<4x256xf32>
    %79 = arith.mulf %76, %78 : vector<4x256xf32>
    %c8 = arith.constant 8 : index
    %c0_50 = arith.constant 0 : index
    %c0_51 = arith.constant 0 : index
    %80 = vector.load %arg4[%c8, %c0_50, %c0_51] : memref<9x4x1xf32, #tpu.memory_space<vmem>>, vector<1x4x1xf32>
    %81 = vector.shape_cast %80 : vector<1x4x1xf32> to vector<4x1xf32>
    %82 = vector.broadcast %81 : vector<4x1xf32> to vector<4x256xf32>
    %83 = arith.mulf %79, %82 : vector<4x256xf32>
    %84 = arith.addf %75, %83 : vector<4x256xf32>
    %c0_52 = arith.constant 0 : index
    %c0_53 = arith.constant 0 : index
    %85 = vector.load %arg5[%c0_52, %c0_53] : memref<4x1xf32, #tpu.memory_space<vmem>>, vector<4x1xf32>
    %86 = vector.broadcast %85 : vector<4x1xf32> to vector<4x256xf32>
    %87 = arith.addf %84, %86 : vector<4x256xf32>
    %88 = arith.addf %87, %1 : vector<4x256xf32>
    %c0_54 = arith.constant 0 : index
    %c0_55 = arith.constant 0 : index
    %89 = vector.load %arg6[%c0_54, %c0_55] : memref<8x4xf32, #tpu.memory_space<vmem>>, vector<8x4xf32>
    %cst_56 = arith.constant dense<0.000000e+00> : vector<8x256xf32>
    %90 = tpu.matmul %89, %88, %cst_56 {dimension_numbers = #tpu.dot_dimension_numbers<[1], [0], [0], [1], [0, 0, 1, 1], [], []>} : vector<8x4xf32>, vector<4x256xf32>, vector<8x256xf32> -> vector<8x256xf32>
    %c0_57 = arith.constant 0 : index
    %c0_58 = arith.constant 0 : index
    %91 = vector.load %arg7[%c0_57, %c0_58] : memref<8x1xf32, #tpu.memory_space<vmem>>, vector<8x1xf32>
    %92 = vector.broadcast %91 : vector<8x1xf32> to vector<8x256xf32>
    %93 = arith.addf %90, %92 : vector<8x256xf32>
    %cst_59 = arith.constant 0.000000e+00 : f32
    %94 = vector.broadcast %cst_59 : f32 to vector<8x256xf32>
    %95 = arith.maximumf %93, %94 : vector<8x256xf32>
    %c0_60 = arith.constant 0 : index
    %c0_61 = arith.constant 0 : index
    %96 = vector.load %arg8[%c0_60, %c0_61] : memref<8x8xf32, #tpu.memory_space<vmem>>, vector<8x8xf32>
    %cst_62 = arith.constant dense<0.000000e+00> : vector<8x256xf32>
    %97 = tpu.matmul %96, %95, %cst_62 {dimension_numbers = #tpu.dot_dimension_numbers<[1], [0], [0], [1], [0, 0, 1, 1], [], []>} : vector<8x8xf32>, vector<8x256xf32>, vector<8x256xf32> -> vector<8x256xf32>
    %c0_63 = arith.constant 0 : index
    %c0_64 = arith.constant 0 : index
    %98 = vector.load %arg9[%c0_63, %c0_64] : memref<8x4xf32, #tpu.memory_space<vmem>>, vector<8x4xf32>
    %cst_65 = arith.constant dense<0.000000e+00> : vector<8x256xf32>
    %99 = tpu.matmul %98, %88, %cst_65 {dimension_numbers = #tpu.dot_dimension_numbers<[1], [0], [0], [1], [0, 0, 1, 1], [], []>} : vector<8x4xf32>, vector<4x256xf32>, vector<8x256xf32> -> vector<8x256xf32>
    %100 = arith.addf %97, %99 : vector<8x256xf32>
    %c0_66 = arith.constant 0 : index
    %c0_67 = arith.constant 0 : index
    %101 = vector.load %arg10[%c0_66, %c0_67] : memref<8x1xf32, #tpu.memory_space<vmem>>, vector<8x1xf32>
    %102 = vector.broadcast %101 : vector<8x1xf32> to vector<8x256xf32>
    %103 = arith.addf %100, %102 : vector<8x256xf32>
    %c0_68 = arith.constant 0 : index
    %c0_69 = arith.constant 0 : index
    %c0_70 = arith.constant 0 : index
    %104 = vector.load %arg13[%c0_68, %c0_69, %c0_70] : memref<1x8x256xf32, #tpu.memory_space<vmem>>, vector<1x8x256xf32>
    %105 = vector.shape_cast %104 : vector<1x8x256xf32> to vector<8x256xf32>
    %106 = vector.shape_cast %103 : vector<8x256xf32> to vector<1x8x256xf32>
    tpu.vector_store %arg13[%c0_68, %c0_69, %c0_70], %106 {strides = array<i32>} : memref<1x8x256xf32, #tpu.memory_space<vmem>>, vector<1x8x256xf32>,
    return
  }
  func.func @transform_0(%arg0: i32) -> (i32, i32, i32) {
    %c0_i32 = arith.constant 0 : i32
    %c0_i32_0 = arith.constant 0 : i32
    %c0_i32_1 = arith.constant 0 : i32
    return %arg0, %c0_i32, %c0_i32_0 : i32, i32, i32
  }
  func.func @transform_1(%arg0: i32) -> (i32, i32) {
    %c0_i32 = arith.constant 0 : i32
    %c0_i32_0 = arith.constant 0 : i32
    %c0_i32_1 = arith.constant 0 : i32
    return %c0_i32, %c0_i32_0 : i32, i32
  }
  func.func @transform_2(%arg0: i32) -> (i32, i32) {
    %c0_i32 = arith.constant 0 : i32
    %c0_i32_0 = arith.constant 0 : i32
    %c0_i32_1 = arith.constant 0 : i32
    return %c0_i32, %c0_i32_0 : i32, i32
  }
  func.func @transform_3(%arg0: i32) -> (i32, i32, i32) {
    %c0_i32 = arith.constant 0 : i32
    %c0_i32_0 = arith.constant 0 : i32
    %c0_i32_1 = arith.constant 0 : i32
    %c0_i32_2 = arith.constant 0 : i32
    return %c0_i32, %c0_i32_0, %c0_i32_1 : i32, i32, i32
  }
  func.func @transform_4(%arg0: i32) -> (i32, i32) {
    %c0_i32 = arith.constant 0 : i32
    %c0_i32_0 = arith.constant 0 : i32
    %c0_i32_1 = arith.constant 0 : i32
    return %c0_i32, %c0_i32_0 : i32, i32
  }
  func.func @transform_5(%arg0: i32) -> (i32, i32) {
    %c0_i32 = arith.constant 0 : i32
    %c0_i32_0 = arith.constant 0 : i32
    %c0_i32_1 = arith.constant 0 : i32
    return %c0_i32, %c0_i32_0 : i32, i32
  }
  func.func @transform_6(%arg0: i32) -> (i32, i32) {
    %c0_i32 = arith.constant 0 : i32
    %c0_i32_0 = arith.constant 0 : i32
    %c0_i32_1 = arith.constant 0 : i32
    return %c0_i32, %c0_i32_0 : i32, i32
  }
  func.func @transform_7(%arg0: i32) -> (i32, i32) {
    %c0_i32 = arith.constant 0 : i32
    %c0_i32_0 = arith.constant 0 : i32
    %c0_i32_1 = arith.constant 0 : i32
    return %c0_i32, %c0_i32_0 : i32, i32
  }
  func.func @transform_8(%arg0: i32) -> (i32, i32) {
    %c0_i32 = arith.constant 0 : i32
    %c0_i32_0 = arith.constant 0 : i32
    %c0_i32_1 = arith.constant 0 : i32
    return %c0_i32, %c0_i32_0 : i32, i32
  }
  func.func @transform_9(%arg0: i32) -> (i32, i32) {
    %c0_i32 = arith.constant 0 : i32
    %c0_i32_0 = arith.constant 0 : i32
    %c0_i32_1 = arith.constant 0 : i32
    return %c0_i32, %c0_i32_0 : i32, i32
  }
  func.func @transform_10(%arg0: i32) -> (i32, i32) {
    %c0_i32 = arith.constant 0 : i32
    %c0_i32_0 = arith.constant 0 : i32
    %c0_i32_1 = arith.constant 0 : i32
    return %c0_i32, %c0_i32_0 : i32, i32
  }
  func.func @transform_11(%arg0: i32) -> (i32, i32) {
    %c0_i32 = arith.constant 0 : i32
    %c0_i32_0 = arith.constant 0 : i32
    %c0_i32_1 = arith.constant 0 : i32
    return %c0_i32, %c0_i32_0 : i32, i32
  }
  func.func @transform_12(%arg0: i32) -> (i32, i32, i32) {
    %c0_i32 = arith.constant 0 : i32
    %c0_i32_0 = arith.constant 0 : i32
    %c0_i32_1 = arith.constant 0 : i32
    return %arg0, %c0_i32, %c0_i32_0 : i32, i32, i32
  }
}

</mosaic_0001>

<bundles_post_ra>
// kernel: tpu_custom_call.1
= control target key start
LH: loop header
LB: loop body
LE: loop exit
PB: predicated region body
PF: predicated region fallthrough
CT: control target
= control target key end

     0   :  { %s1583_s0 = inlined_call_operand.vmem [shape: f32[2,4,256], index: 0, kind: input, shape index: {}]   ;;  %s1584_s1 = inlined_call_operand.vmem [shape: f32[4,1], index: 1, kind: input, shape index: {}]   ;;  %s1585_s2 = inlined_call_operand.vmem [shape: f32[4,1], index: 2, kind: input, shape index: {}]   ;;  %s1586_s3 = inlined_call_operand.vmem [shape: f32[9,4,1], index: 3, kind: input, shape index: {}]   ;;  %s1587_s4 = inlined_call_operand.vmem [shape: f32[4,1], index: 4, kind: input, shape index: {}]   ;;  %s1588_s5 = inlined_call_operand.vmem [shape: f32[8,4], index: 5, kind: input, shape index: {}]   ;;  %s1589_s6 = inlined_call_operand.vmem [shape: f32[8,1], index: 6, kind: input, shape index: {}]   ;;  %s1590_s7 = inlined_call_operand.vmem [shape: f32[8,8], index: 7, kind: input, shape index: {}]   ;;  %s1591_s8 = inlined_call_operand.vmem [shape: f32[8,4], index: 8, kind: input, shape index: {}]   ;;  %s1592_s9 = inlined_call_operand.vmem [shape: f32[8,1], index: 9, kind: input, shape index: {}]   ;;  %s1593_s10 = inlined_call_operand.vmem [shape: f32[1,256], index: 10, kind: input, shape index: {}]   ;;  %s1594_s11 = inlined_call_operand.vmem [shape: f32[1,256], index: 11, kind: input, shape index: {}]   ;;  %s1595_s12 = inlined_call_operand.hbm [shape: f32[2,8,256], index: 12, kind: output, shape index: {}]  }
   0x1   :  { %1598 = sst [smem:[#allocation6_spill]] %s1583_s0 }
   0x2   :  { %1599 = sst [smem:[#allocation7_spill]] %s1584_s1 }
   0x3   :  { %1600 = sst [smem:[#allocation8_spill]] %s1585_s2 }
   0x4   :  { %17 = vsyncpa [#allocation4], 0 }
   0x5   :  { %19 = vsyncpa [#allocation4 + $0x1], 0  ;;  %s1373_s21 = smov 0   ;;  %s1375_s22 = smov 0  }
   0x6   :  { %s1377_s23 = smov 0   ;;  %s1379_s24 = smov 0  }
   0x7 LB: > { %s1394_s25 = sadd.s32 4294967295, %s1290_s24   ;;  %s1145_s26 = sadd.s32 4294967294, %s1290_s24   ;;  %s1290_s24 = sphi %s1379_s24, %s1610_s24   ;;  %s1286_s23 = sphi %s1377_s23, %s1609_s23   ;;  %s1282_s22 = sphi %s1375_s22, %s1608_s22   ;;  %s1278_s21 = sphi %s1373_s21, %s1607_s21  }
   0x8   : > { %s1398_s27 = sadd.s32 1, %s1290_s24   ;;  %s289_s28 = sadd.s32 1, %s1286_s23 }
   0x9   : > { %s286_s29 = ssub.s32 %s1290_s24, %s1398_s27  ;;  %p299_p0 = scmp.ne.s32.totalorder %s1286_s23, %s1282_s22 }
   0xa   : > { %p287_p1 = scmp.eq.s32.totalorder %s286_s29, 0  ;;  %p300_p2 = scmp.eq.s32.totalorder %s1394_s25, 1 }
   0xb   : > { %p305_p3 = scmp.ne.s32.totalorder %s1282_s22, %s1278_s21  ;;  %p306_p4 = scmp.eq.s32.totalorder %s1145_s26, 1 }
   0xc   : > { %s1409_s30 = scalar_select %p287_p1, %s1286_s23, %s289_s28  }
   0xd   : > { %p1411_p5 = por %p300_p2, %p299_p0  ;;  %p1415_p6 = por %p306_p4, %p305_p3 }
   0xe   : > { %p1148_p7 = scmp.ge.s32.totalorder %s1290_s24, 1  ;;  %p365_p8 = scmp.lt.s32.totalorder %s1290_s24, 3 }
  0x10   : > { %p366_p9 = pnand %p1148_p7, %p365_p8 }
  0x11   : > { %s1603_s1 = sld [smem:[#allocation7_spill]] (!%p366_p9)  ;;  %s1294_s20 = smov (!%p366_p9), 113  }
  0x12   : > { %369 = sbr.rel (%p366_p9) target bundleno = 864 (0x360), region = 68  ;;  %s1604_s2 = sld [smem:[#allocation8_spill]] (!%p366_p9) }
  0x13   : > { %s1596_s29 = smov (!%p366_p9), 127   ;;  %s1296_s17 = smov (!%p366_p9), 1  }
  0x14   : > { %s1299_s18 = smov (!%p366_p9), 111   ;;  %p407_p10 = scmp.lt.s32.totalorder (!%p366_p9), %s1394_s25, 1 }
  0x15   : > { %s1605_s0 = sld [smem:[#allocation6_spill]] (!%p366_p9)  ;;  %s1606_s28 = smov (!%p366_p9), 127  }
  0x16   : > { %s1301_s15 = smov (!%p366_p9), 110   ;;  %s1302_s16 = smov (!%p366_p9), 95  }
  0x17   : > { %v1152_v0 = vld [vmem:[%s1586_s3 + $0x4] sm:$0xf]  ;;  %v415_v1 = vld [vmem:[%s1603_s1] sm:$0xf]  ;;  %v423_v2 = vlaneseq  ;;  %v1292_v3 = vmov 0   ;;  %v1293_v17 = vmov 0.0  }
  0x18   : > { %1229 = vset.pattern.permute.xlu1 %v1292_v3  ;;  %1228 = vset.pattern.permute.xlu0 %v1292_v3  ;;  %v1153_v4 = vld [vmem:[%s1586_s3 + $0x8] sm:$0xf]  ;;  %v429_v6 = vld [vmem:[%s1604_s2] sm:$0xf]  ;;  %v1154_v14 = vld [vmem:[%s1586_s3 + $0xc] sm:$0xf] }
  0x19   : > { %489 = vperm.xlu1 %1229, %v1152_v0   ;;  %418 = vperm.xlu0 %1228, %v415_v1   ;;  %v424_v5 = vshrl.u32 %v423_v2, 7  ;;  %v517_v7 = vld [vmem:[%s1594_s11] sm:$0x3]  ;;  %413 = vst [vmem:[#allocation2] sm:$0xf] %v1293_v17  ;;  %s408_s19 = scalar_select %p407_p10, %s1394_s25, 1 }
  0x1a   : > { %v446_v8 = vld [vmem:[%s1593_s10] sm:$0x3]  ;;  %414 = vst [vmem:[#allocation2 + $0xc] sm:$0xf] %v1293_v17  ;;  %901 = vmatprep.mubr.f32.mxu0 %v1293_v17  ;;  %979 = vmatprep.mubr.f32.mxu1 %v1293_v17  ;;  %v1155_v19 = vld [vmem:[%s1586_s3 + $0x10] sm:$0xf] }
  0x1b   : > { %v450_v9 = vsub.s32 0, %v424_v5  ;;  %v454_v10 = vsub.s32 1, %v424_v5  ;;  %v1156_v20 = vld [vmem:[%s1586_s3 + $0x14] sm:$0xf]  ;;  %v1157_v21 = vld [vmem:[%s1586_s3 + $0x18] sm:$0xf] }
  0x1c   : > { %v1159_v22 = vld [vmem:[%s1586_s3 + $0x20] sm:$0xf]  ;;  %v1158_v23 = vld [vmem:[%s1586_s3 + $0x1c] sm:$0xf]  ;;  %v1300_v25 = vmov 839922192  }
  0x1d   : > { %541 = vperm.xlu1 %1229, %v1153_v4   ;;  %432 = vperm.xlu0 %1228, %v429_v6   ;;  %v522_v11 = vrot.slane %v517_v7, %v450_v9  ;;  %v526_v12 = vrot.slane %v517_v7, %v454_v10  ;;  %v451_v13 = vrot.slane %v446_v8, %v450_v9  ;;  %v466_v24 = vld [vmem:[%s1586_s3] sm:$0xf]  ;;  %v421_v26 = vunpack.c.l.s4 %v1300_v25  ;;  %s1305_s1 = smov 96  }
  0x1e   : > { %v455_v15 = vrot.slane %v446_v8, %v454_v10  ;;  %vm531_vm0 = vcmask 924672   ;;  %vm511_vm1 = vcmask 1039360   ;;  %vm639_vm2 = vcmask 7168  }
  0x1f   : > { %v527_v16 = vcombine.low %v522_v11, %v526_v12  ;;  %v422_v27 = vunpack.c.0.s8 %v421_v26  ;;  %vm680_vm3 = vcmask 121856   ;;  %vm751_vm4 = vcmask 138240  }
  0x20   : > { %v456_v18 = vcombine.low %v451_v13, %v455_v15  ;;  %vm460_vm5 = vcmask 908288   ;;  %vm509_vm6 = vcmask 1043456   ;;  %vm562_vm7 = vcmask 1031168  }
  0x21   : > { %582 = vperm.xlu1 %1229, %v1154_v14   ;;  %528 = vrot.lane.b32.xlu0 %v527_v16, %s1294_s20  ;;  %s1297_s20 = smov 15   ;;  %v1472_v28 = vsub.s32 %v422_v27, %v424_v5  ;;  %v635_v46 = vld [vmem:[#allocation2 + $0xc] sm:$0xf]  ;;  %v787_v27 = vld [vmem:[%s1587_s4] sm:$0xf]  ;;  %vm603_vm8 = vcmask 916480  }
  0x22   : > { %v676_v12 = vld [vmem:[#allocation2 + $0xc] sm:$0xf]  ;;  %vm668_vm9 = vcmask 900096   ;;  %vm709_vm10 = vcmask 785408   ;;  %vm741_vm11 = vcmask 777216   ;;  %vm780_vm12 = vcmask 769024  }
  0x23   : > { %vm829_vm13 = vcmask 31744   ;;  %vm986_vm14 = vcmask 64512  }
  0x25   : > { %614 = vperm.xlu1 %1229, %v1155_v19   ;;  %570 = vrot.lane.b32.xlu0 %v456_v18, %s1596_s29 }
  0x29   : > { %636 = vrot.lane.b32.xlu1 %v527_v16, %s1296_s17  ;;  %649 = vperm.xlu0 %1228, %v1156_v20   ;;  %s1298_s17 = smov 17  }
  0x2d   : > { %677 = vrot.lane.b32.xlu1 %v456_v18, %s1297_s20  ;;  %690 = vperm.xlu0 %1228, %v1157_v21   ;;  %s1172_s20 = sshll.u32 %s408_s19, 3  ;;  %s1303_s19 = smov 126  }
  0x2e   : > { %s411_s26 = scalar_lea.vmem %s1605_s0, %s1172_s20  ;;  %s1304_s20 = smov 112  }
  0x2f   : > { %v1474_v31 = vld [vmem:[%s411_s26] sm:$0xff]  ;;  %s1307_s0 = smov [#allocation3]  }
  0x31   : > { %761 = vperm.xlu1 %1229, %v1159_v22   ;;  %722 = vperm.xlu0 %1228, %v1158_v23  }
  0x35   : > { %469 = vperm.xlu1 %1229, %v466_v24   ;;  %748 = vrot.lane.b32.xlu0 %v527_v16, %s1298_s17 }
  0x39   : > { %457 = vrot.lane.b32.xlu0 %v456_v18, %s1299_s18 }
  0x94   : > { %v490_v29 = vpop.permute.xlu1 %489  ;;  %v419_v30 = vpop.permute.xlu0 %418 }
  0x95   : > { %v426_v32 = vrot.slane %v419_v30, %v1472_v28  ;;  %v497_v42 = vrot.slane %v490_v29, %v1472_v28 }
  0x97   : > { %v428_v33 = vmul.f32 %v426_v32, %v1474_v31 }
  0x98   : > { %v542_v34 = vpop.permute.xlu1 %541  ;;  %v433_v35 = vpop.permute.xlu0 %432 }
  0x99   : > { %v440_v36 = vrot.slane %v433_v35, %v1472_v28  ;;  %v549_v2 = vrot.slane %v542_v34, %v1472_v28 }
  0x9b   : > { %v1479_v37 = vadd.f32 %v440_v36, %v428_v33  ;;  %v717_v33 = vld [vmem:[#allocation2 + $0xc] sm:$0xf] }
  0x9c   : > { %v583_v38 = vpop.permute.xlu1 %582  ;;  %v529_v39 = vpop.permute.xlu0 %528 }
  0x9d   : > { %443 = vst [vmem:[#allocation2 + $0x4] sm:$0xff] %v1479_v37  ;;  %v530_v53 = vrot.slane %v529_v39, 4  ;;  %v590_v11 = vrot.slane %v583_v38, %v1472_v28 }
  0x9f   : > { %v532_v60 = vsel %vm531_vm0, %v530_v53, %v529_v39 }
  0xa0   : > { %v615_v40 = vpop.permute.xlu1 %614  ;;  %v571_v41 = vpop.permute.xlu0 %570 }
  0xa1   : > { %v622_v47 = vrot.slane %v615_v40, %v1472_v28  ;;  %v572_v57 = vrot.slane %v571_v41, 4 }
  0xa3   : > { %v624_v54 = vmul.f32 %v622_v47, %v1479_v37  ;;  %v573_v3 = vsel %vm511_vm1, %v572_v57, %v571_v41 }
  0xa4   : > { %v1483_v43 = vld [vmem:[#allocation2] sm:$0xff]  ;;  %v637_v44 = vpop.permute.xlu1 %636  ;;  %v650_v45 = vpop.permute.xlu0 %649  ;;  %v484_v56 = vld [vmem:[#allocation2 + $0x8] sm:$0xf] }
  0xa5   : > { %v638_v48 = vrot.slane %v637_v44, 4  ;;  %v499_v49 = vmul.f32 %v497_v42, %v1483_v43  ;;  %v657_v51 = vrot.slane %v650_v45, %v1472_v28  ;;  %v536_v61 = vmul.f32 %v530_v53, %v484_v56  ;;  %v569_v0 = vld [vmem:[#allocation2 + $0x8] sm:$0xf] }
  0xa6   : > { %v500_v62 = vmul.f32 %v497_v42, %v484_v56  ;;  %v535_v63 = vmul.f32 %v532_v60, %v1483_v43  ;;  %v577_v5 = vmul.f32 %v572_v57, %v569_v0  ;;  %v576_v7 = vmul.f32 %v573_v3, %v1483_v43 }
  0xa7   : > { %v644_v50 = vmul.f32 %v638_v48, %v635_v46  ;;  %503 = vrot.lane.b32.xlu1 %v499_v49, %s1606_s28  ;;  %v552_v6 = vmul.f32 %v549_v2, %v536_v61  ;;  %v640_v8 = vsel %vm639_vm2, %v638_v48, %v637_v44  ;;  %v445_v61 = vld [vmem:[#allocation2 + $0x8] sm:$0xf] }
  0xa8   : > { %v691_v52 = vpop.permute.xlu0 %690  ;;  %v678_v4 = vpop.permute.xlu1 %677  ;;  %v551_v10 = vmul.f32 %v549_v2, %v535_v63  ;;  %v643_v14 = vmul.f32 %v640_v8, %v1479_v37  ;;  %v593_v15 = vmul.f32 %v590_v11, %v577_v5  ;;  %v592_v19 = vmul.f32 %v590_v11, %v576_v7 }
  0xa9   : > { %v660_v55 = vmul.f32 %v657_v51, %v644_v50  ;;  %v679_v9 = vrot.slane %v678_v4, 4  ;;  %v698_v21 = vrot.slane %v691_v52, %v1472_v28 }
  0xaa   : > { %v659_v22 = vmul.f32 %v657_v51, %v643_v14 }
  0xab   : > { %665 = vrot.lane.b32.xlu0 %v660_v55, %s1301_s15  ;;  %626 = vrot.lane.b32.xlu1 %v624_v54, %s1299_s18  ;;  %v685_v16 = vmul.f32 %v679_v9, %v676_v12  ;;  %v681_v20 = vsel %vm680_vm3, %v679_v9, %v678_v4 }
  0xac   : > { %v723_v58 = vpop.permute.xlu0 %722  ;;  %v684_v23 = vmul.f32 %v681_v20, %v1479_v37  ;;  %v762_v26 = vpop.permute.xlu1 %761 }
  0xad   : > { %v730_v59 = vrot.slane %v723_v58, %v1472_v28  ;;  %v701_v24 = vmul.f32 %v698_v21, %v685_v16  ;;  %v769_v32 = vrot.slane %v762_v26, %v1472_v28 }
  0xae   : > { %v700_v30 = vmul.f32 %v698_v21, %v684_v23 }
  0xaf   : > { %v732_v1 = vmul.f32 %v730_v59, %v1479_v37  ;;  %505 = vrot.lane.b32.xlu0 %v500_v62, %s1606_s28  ;;  %v733_v36 = vmul.f32 %v730_v59, %v717_v33  ;;  %s1306_s28 = smov 94  }
  0xb0   : > { %v749_v13 = vpop.permute.xlu0 %748  ;;  %v470_v39 = vpop.permute.xlu1 %469 }
  0xb1   : > { %736 = vrot.lane.b32.xlu1 %v732_v1, %s1302_s16  ;;  %v750_v18 = vrot.slane %v749_v13, 4  ;;  %v477_v55 = vrot.slane %v470_v39, %v1472_v28 }
  0xb3   : > { %557 = vrot.lane.b32.xlu0 %v552_v6, %s1303_s19  ;;  %v752_v25 = vsel %vm751_vm4, %v750_v18, %v749_v13  ;;  %v756_v34 = vmul.f32 %v750_v18, %v717_v33 }
  0xb4   : > { %v755_v29 = vmul.f32 %v752_v25, %v1479_v37  ;;  %v458_v37 = vpop.permute.xlu0 %457 }
  0xb5   : > { %555 = vrot.lane.b32.xlu1 %v551_v10, %s1303_s19  ;;  %v772_v38 = vmul.f32 %v769_v32, %v756_v34  ;;  %v459_v44 = vrot.slane %v458_v37, 4 }
  0xb6   : > { %v771_v35 = vmul.f32 %v769_v32, %v755_v29 }
  0xb7   : > { %598 = vrot.lane.b32.xlu0 %v593_v15, %s1304_s20  ;;  %v461_v48 = vsel %vm460_vm5, %v459_v44, %v458_v37  ;;  %v465_v0 = vmul.f32 %v459_v44, %v445_v61 }
  0xb8   : > { %v464_v51 = vmul.f32 %v1483_v43, %v461_v48 }
  0xb9   : > { %596 = vrot.lane.b32.xlu1 %v592_v19, %s1304_s20  ;;  %v480_v7 = vmul.f32 %v477_v55, %v465_v0 }
  0xba   : > { %v479_v59 = vmul.f32 %v477_v55, %v464_v51 }
  0xbb   : > { %663 = vrot.lane.b32.xlu0 %v659_v22, %s1301_s15 }
  0xbd   : > { %706 = vrot.lane.b32.xlu1 %v701_v24, %s1305_s1 }
  0xbf   : > { %790 = vperm.xlu0 %1228, %v787_v27  }
  0xc1   : > { %704 = vrot.lane.b32.xlu1 %v700_v30, %s1305_s1 }
  0xc3   : > { %775 = vrot.lane.b32.xlu0 %v771_v35, %s1306_s28 }
  0xc5   : > { %738 = vrot.lane.b32.xlu1 %v733_v36, %s1302_s16  ;;  %s1173_s16 = sshll.u32 %s1394_s25, 8  ;;  %s1234_s25 = sshll.u32 %s1307_s0, 4  ;;  %s1235_s25 = int_to_ptr.vmem [resolvable:$false] %s1234_s25 }
  0xc6   : > { %s1084_s29 = scalar_lea.hbm %s1595_s12, %s1173_s16 }
  0xc7   : > { %777 = vrot.lane.b32.xlu0 %v772_v38, %s1306_s28 }
  0xc9   : > { %803 = vrot.lane.b32.xlu1 %v1474_v31, %s1299_s18  ;;  %s404_s18 = sand.u32 1, %s1282_s22  }
  0xca   : > { %s1149_s15 = sshll.u32 %s404_s18, 4  ;;  %s1072_s26 = scalar_lea.sflag [#allocation4], %s404_s18 }
  0xcb   : > { %s406_s19 = scalar_lea.vmem [#allocation3], %s1149_s15  ;;  %s1236_s15 = scalar_lea.vmem %s1235_s25, 512 }
  0xcc   : > { %s1086_s20 = sshll.u32 %s406_s19, 4  ;;  %s1087_s20 = int_to_ptr.vmem [resolvable:$true] %s1086_s20 }
  0xcd   : > { %s1230_s28 = scalar_lea.vmem %s1087_s20, 256  ;;  %p1237_p0 = scmp.lt.s32.totalorder %s1087_s20, %s1235_s25 }
  0xce   : > { %p1231_p11 = scmp.ne.s32.totalorder %s1087_s20, %s1230_s28  ;;  %p1238_p1 = scmp.lt.s32.totalorder %s1236_s15, %s1230_s28 }
  0xd0   : > { %p1232_p12 = pnand %p1231_p11, %p1411_p5  ;;  %p1239_p2 = por %p1238_p1, %p1237_p0 }
  0xd2   : > { %p1233_p13 = pneg %p1232_p12 }
  0xd4   : > { %p1240_p3 = pnand %p1239_p2, %p1233_p13 }
 0x119   : > { %v504_v40 = vpop.permute.xlu1 %503 }
 0x11a   : > { %v507_v49 = vrot.slane %v504_v40, 4 }
 0x11d   : > { %v666_v41 = vpop.permute.xlu0 %665  ;;  %v627_v42 = vpop.permute.xlu1 %626 }
 0x11e   : > { %v628_v6 = vrot.slane %v627_v42, 4 }
 0x120   : > { %v629_v12 = vsel %vm460_vm5, %v628_v6, %v627_v42 }
 0x121   : > { %v506_v45 = vpop.permute.xlu0 %505 }
 0x122   : > { %v508_v46 = vrot.slane %v506_v45, 4  ;;  %v516_v10 = vadd.f32 %v506_v45, %v480_v7 }
 0x123   : > { %v737_v47 = vpop.permute.xlu1 %736 }
 0x124   : > { %v510_v52 = vsel %vm509_vm6, %v507_v49, %v508_v46  ;;  %v740_v26 = vrot.slane %v737_v47, 4 }
 0x125   : > { %v558_v50 = vpop.permute.xlu0 %557  ;;  %v512_v56 = vsel %vm511_vm1, %v504_v40, %v510_v52 }
 0x126   : > { %v560_v53 = vrot.slane %v558_v50, 4  ;;  %v515_v1 = vadd.f32 %v512_v56, %v479_v59  ;;  %v567_v14 = vadd.f32 %v558_v50, %v516_v10  ;;  %v742_v35 = vsel %vm741_vm11, %v740_v26, %v737_v47  ;;  %v812_v47 = vld [vmem:[%s1589_s6] sm:$0xff] }
 0x127   : > { %v556_v31 = vpop.permute.xlu1 %555 }
 0x128   : > { %v559_v54 = vrot.slane %v556_v31, 4 }
 0x129   : > { %v599_v58 = vpop.permute.xlu0 %598 }
 0x12a   : > { %v561_v57 = vsel %vm509_vm6, %v559_v54, %v560_v53  ;;  %v601_v63 = vrot.slane %v599_v58, 4  ;;  %v608_v18 = vadd.f32 %v599_v58, %v567_v14  ;;  %v811_v58 = vld [vmem:[%s1588_s5] sm:$0xff] }
 0x12b   : > { %v597_v60 = vpop.permute.xlu1 %596  ;;  %v563_v62 = vsel %vm562_vm7, %v556_v31, %v561_v57 }
 0x12c   : > { %v600_v43 = vrot.slane %v597_v60, 4  ;;  %v566_v3 = vadd.f32 %v563_v62, %v515_v1  ;;  %v633_v23 = vadd.f32 %v628_v6, %v608_v18 }
 0x12d   : > { %v664_v9 = vpop.permute.xlu0 %663 }
 0x12e   : > { %v602_v2 = vsel %vm509_vm6, %v600_v43, %v601_v63  ;;  %v667_v13 = vrot.slane %v664_v9, 4 }
 0x12f   : > { %v604_v4 = vsel %vm603_vm8, %v597_v60, %v602_v2  ;;  %v707_v5 = vpop.permute.xlu1 %706  ;;  %v911_v60 = vld [vmem:[%s1591_s8] sm:$0xff] }
 0x130   : > { %v607_v8 = vadd.f32 %v604_v4, %v566_v3  ;;  %v669_v19 = vsel %vm668_vm9, %v667_v13, %v664_v9  ;;  %v670_v21 = vsel %vm668_vm9, %v667_v13, %v666_v41  ;;  %v910_v3 = vld [vmem:[%s1590_s7] sm:$0xff] }
 0x131   : > { %v674_v30 = vadd.f32 %v670_v21, %v633_v23 }
 0x132   : > { %v632_v15 = vadd.f32 %v629_v12, %v607_v8 }
 0x133   : > { %v705_v11 = vpop.permute.xlu1 %704 }
 0x134   : > { %v708_v16 = vrot.slane %v705_v11, 4  ;;  %v673_v20 = vadd.f32 %v669_v19, %v632_v15 }
 0x136   : > { %v710_v22 = vsel %vm709_vm10, %v708_v16, %v705_v11  ;;  %v711_v27 = vsel %vm709_vm10, %v708_v16, %v707_v5 }
 0x137   : > { %v739_v24 = vpop.permute.xlu1 %738  ;;  %v714_v29 = vadd.f32 %v710_v22, %v673_v20  ;;  %v715_v32 = vadd.f32 %v711_v27, %v674_v30 }
 0x138   : > { %v743_v36 = vsel %vm741_vm11, %v740_v26, %v739_v24 }
 0x139   : > { %v746_v39 = vadd.f32 %v742_v35, %v714_v29  ;;  %v747_v41 = vadd.f32 %v743_v36, %v715_v32 }
 0x13a   : > { %v791_v25 = vpop.permute.xlu0 %790 }
 0x13b   : > { %v804_v34 = vpop.permute.xlu1 %803  ;;  %v798_v42 = vrot.slane %v791_v25, %v1472_v28  ;;  %v1061_v28 = vld [vmem:[%s1592_s9] sm:$0xff] }
 0x13c   : > { %v805_v40 = vrot.slane %v804_v34, 4 }
 0x13e   : > { %v776_v33 = vpop.permute.xlu0 %775  ;;  %v806_v50 = vsel %vm460_vm5, %v805_v40, %v804_v34 }
 0x13f   : > { %v779_v38 = vrot.slane %v776_v33, 4 }
 0x141   : > { %v781_v37 = vsel %vm780_vm12, %v779_v38, %v776_v33 }
 0x142   : > { %v785_v44 = vadd.f32 %v781_v37, %v746_v39  ;;  %v778_v45 = vpop.permute.xlu0 %777 }
 0x143   : > { %v782_v46 = vsel %vm780_vm12, %v779_v38, %v778_v45 }
 0x144   : > { %v800_v48 = vadd.f32 %v798_v42, %v785_v44  ;;  %v786_v49 = vadd.f32 %v782_v46, %v747_v41 }
 0x146   : > { %v809_v51 = vadd.f32 %v806_v50, %v800_v48  ;;  %v801_v52 = vadd.f32 %v798_v42, %v786_v49 }
 0x148   : > { %v810_v31 = vadd.f32 %v805_v40, %v801_v52  ;;  %v820_v53 = vcombine.high %v809_v51, %v809_v51 }
 0x14a   : > { %825 = vrot.lane.b32.xlu1 %v810_v31, %s1298_s17  ;;  %823 = vrot.lane.b32.xlu0 %v820_v53, %s1298_s17 }
 0x14e   : > { %815 = vperm.xlu1 %1229, %v812_v47   ;;  %821 = vrot.lane.b32.xlu0 %v809_v51, %s1298_s17 }
 0x152   : > { %1064 = vperm.xlu0 %1228, %v1061_v28  }
 0x1bc   : > { %v826_v54 = vpop.permute.xlu1 %825  ;;  %v824_v55 = vpop.permute.xlu0 %823 }
 0x1bd   : > { %v828_v56 = vsel %vm751_vm4, %v824_v55, %v826_v54 }
 0x1be   : > { %1160 = vmatprep.subr.msk.mxu0 %vm509_vm6, %v828_v56  ;;  %1163 = vmatprep.subr.msk.mxu1 %vm509_vm6, %v828_v56 }
 0x1c0   : > { %v822_v57 = vpop.permute.xlu0 %821 }
 0x1c1   : > { %v827_v59 = vsel %vm751_vm4, %v822_v57, %v824_v55 }
 0x1c2   : > { %1161 = vmatpush1.msk.msra.mxu0 %vm509_vm6, %v827_v59  ;;  %1164 = vmatpush1.msk.msra.mxu1 %vm509_vm6, %v827_v59 }
 0x1c3   : > { %1162 = vmatmul.mubr.msk.f32.vlgmr.msra.gmra.mxu0 %vm829_vm13, %v811_v58  ;;  %1165 = vmatmul.mubr.msk.f32.vlgmr.msra.gmra.mxu1 %vm829_vm13, %v911_v60 }
 0x1c4   : > { %1054 = vmatprep.mubr.f32.mxu0 %v1293_v17 }
 0x1c9   : > { %v816_v62 = vpop.permute.xlu1 %815 }
 0x1cd   : > { %v1065_v5 = vpop.permute.xlu0 %1064 }
 0x283   : > { %v903_v61 = vpop.f32.mrf.mxu0  ;;  %v981_v17 = vpop.f32.mrf.mxu1 }
 0x284   : > { %v904_v63 = vadd.f32 %v903_v61, %v816_v62 }
 0x285   : > { %v905_v43 = vpop.f32.mrf.mxu0  ;;  %v983_v7 = vpop.f32.mrf.mxu1 }
 0x286   : > { %v906_v0 = vadd.f32 %v905_v43, %v816_v62  ;;  %v908_v2 = vmax.f32 %v904_v63, 0.0 }
 0x288   : > { %v909_v1 = vmax.f32 %v906_v0, 0.0 }
 0x28a   : > { %1020 = vmatprep.subr.mxu0 %v909_v1 }
 0x28b   : > { %1021 = vmatpush1.msra.mxu0 %v908_v2 }
 0x28c   : > { %1166 = vmatmul.mubr.msk.f32.vlgmr.msra.gmra.mxu0 %vm986_vm14, %v910_v3 }
 0x34c   : > { %v1056_v4 = vpop.f32.mrf.mxu0 }
 0x34d   : > { %v1057_v6 = vadd.f32 %v1056_v4, %v981_v17 }
 0x34e   : > { %v1058_v8 = vpop.f32.mrf.mxu0 }
 0x34f   : > { %v1067_v9 = vadd.f32 %v1065_v5, %v1057_v6  ;;  %v1059_v10 = vadd.f32 %v1058_v8, %v983_v7 }
 0x351   : > { %1069 = vst [vmem:[%s406_s19] sm:$0xff] %v1067_v9  ;;  %v1068_v11 = vadd.f32 %v1065_v5, %v1059_v10 }
 0x353   : > { %1070 = vst [vmem:[%s406_s19 + $0x8] sm:$0xff] %v1068_v11 }
 0x354   : > { %1243 = shalt.err (!%p1240_p3)
}
 0x355   : > { %s1244_s2 = scalar_lea.hbm %s1084_s29, 256  ;;  %s1248_s19 = scalar_lea.hbm %s1595_s12, 512 }
 0x356   : > { %p1245_p4 = scmp.ne.s32.totalorder %s1084_s29, %s1244_s2  ;;  %p1249_p9 = scmp.lt.s32.totalorder %s1084_s29, %s1595_s12 }
 0x357   : > { %p1250_p10 = scmp.lt.s32.totalorder %s1248_s19, %s1244_s2 }
 0x358   : > { %p1246_p7 = pnand %p1245_p4, %p1411_p5 }
 0x359   : > { %p1251_p11 = por %p1250_p10, %p1249_p9 }
 0x35a   : > { %p1247_p8 = pneg %p1246_p7 }
 0x35c   : > { %p1252_p12 = pnand %p1251_p11, %p1247_p8 }
 0x35e   : > { %1255 = shalt.err (!%p1252_p12)
}
 0x35f   : > { %1174 = dma.vmem_to_hbm [thread:$0]  (%p1411_p5), %s1087_s20, 256, %s1084_s29, %s1072_s26  }
 0x360 PF: > { %p1180_p13 = scmp.ge.s32.totalorder %s1290_s24, 2  ;;  %s1098_s0 = sand.u32 1, %s1278_s21  }
 0x361   : > { %s1099_s28 = scalar_lea.sflag [#allocation4], %s1098_s0 }
 0x362   : > { %p1177_p0 = pnand %p1180_p13, %p1415_p6 }
 0x364   : > { %p1178_p1 = pneg %p1177_p0 }
 0x366   : > { %1273 = dma.done.wait (%p1178_p1), %s1099_s28, 256  }
 0x367   : > { %1275 = vsyncadd (%p1178_p1), %s1099_s28, 4294967040  ;;  %p22_p2 = scmp.ge.s32.totalorder %s1398_s27, 4   ;;  %s1607_s21 = smov %s1282_s22 }
 0x368   : > { %s1608_s22 = smov %s1286_s23  ;;  %s1609_s23 = smov %s1409_s30 }
 0x369   : > { %s1610_s24 = smov %s1398_s27  ;;  %24 = sbr.rel (!%p22_p2) target bundleno = 7 (0x7), region = 111 }
 0x36e   :  { %1104 = vsyncpa [#allocation4], 1 }
 0x36f   :  { %1106 = vsyncpa [#allocation4 + $0x1], 1 }

</bundles_post_ra>
